<compile_context>
chip_gen: v6e
topology: v6e:2x2x1
jax: 0.10.0
libtpu: 0.0.40
codegen_flags: <defaults>
</compile_context>

<pallas_src>
import jax
import jax.numpy as jnp
from jax.experimental import pallas as pl
from jax.experimental.pallas import tpu as pltpu

_LANE = 128
_SUBLANE = 8
_DEFAULT_MIN_PALLAS_BYTES = 256 * 1024   # below this, fused XLA add beats kernel launch
_MAX_TILE_BYTES = 8 * 1024 * 1024        # per-buffer tile target (2-8 MiB sweet spot)


def _add_bias_kernel(x_ref, b_ref, o_ref):
    # Purely elementwise; the (1, tc) bias block broadcasts over the row (sublane) axis.
    o_ref[...] = x_ref[...] + b_ref[...]


def _vmem_budget():
    """Return (vmem_limit_bytes, per-buffer tile byte budget), safe on v5e/v6e/v7x."""
    try:
        cap = int(pltpu.get_tpu_info().vmem_capacity_bytes)
    except Exception:
        cap = 64 * 1024 * 1024           # conservative fallback: v7x per-TC VMEM
    vmem_limit = min((cap * 3) // 4, 96 * 1024 * 1024)
    # 4 big live buffers (double-buffered input + output) + bias row + headroom.
    tile_budget = min(_MAX_TILE_BYTES, vmem_limit // 6)
    return vmem_limit, tile_budget


def _tiled_broadcast_add(x2, brow, vmem_limit, tile_budget):
    """out[n, r] = x2[n, r] + brow[r] for x2: (N, R), brow: (R,)."""
    N, R = x2.shape
    itemsize = x2.dtype.itemsize

    # Lane tile: take the full row when a minimum (8-row) tile fits the budget,
    # otherwise chunk the lane axis in multiples of 128 (huge C*H*W rows).
    if _SUBLANE * R * itemsize <= tile_budget:
        tc = R
    else:
        tc = max(_LANE, (tile_budget // (_SUBLANE * itemsize)) // _LANE * _LANE)
        tc = min(tc, R)

    # Row tile: as many rows as fit the byte budget (multiple of 8); no row cap.
    max_tr = max(1, tile_budget // (tc * itemsize))
    if N <= max_tr:
        tr = N                           # full-extent block dim is always legal
    else:
        tr = max(_SUBLANE, (max_tr // _SUBLANE) * _SUBLANE)

    grid = (pl.cdiv(N, tr), pl.cdiv(R, tc))
    return pl.pallas_call(
        _add_bias_kernel,
        out_shape=jax.ShapeDtypeStruct((N, R), x2.dtype),
        grid=grid,
        in_specs=[
            pl.BlockSpec((tr, tc), lambda i, j: (i, j)),
            pl.BlockSpec((1, tc), lambda i, j: (0, j)),   # bias stays resident over rows
        ],
        out_specs=pl.BlockSpec((tr, tc), lambda i, j: (i, j)),
        compiler_params=pltpu.CompilerParams(
            dimension_semantics=("parallel", "parallel"),
            vmem_limit_bytes=vmem_limit),
    )(x2, brow.reshape(1, R))


def add_bias(x, bias_param, *, min_pallas_bytes=_DEFAULT_MIN_PALLAS_BYTES):
    """AddBias.forward. bias_param is the (C, 1) parameter (bias.unsqueeze(1))."""
    if x.ndim not in (2, 4):
        raise ValueError(f"AddBias expects 2-D or 4-D input, got ndim={x.ndim}")
    bias_row = bias_param.reshape(-1).astype(x.dtype)   # == param.t().view(-1), x's dtype
    C = x.shape[1]
    if bias_row.shape[0] != C:
        raise ValueError(f"bias has {bias_row.shape[0]} channels, x has {C}")

    # KB-scale inputs (typical C=4 action heads): a fused XLA add wins.
    if x.size * x.dtype.itemsize < min_pallas_bytes:
        if x.ndim == 2:
            return x + bias_row[None, :]
        return x + bias_row[None, :, None, None]

    vmem_limit, tile_budget = _vmem_budget()

    if x.ndim == 4:
        B, _, H, W = x.shape
        S = H * W
        # Lane-dense: lane axis = C*H*W (multiple of 128 for real feature maps),
        # sublanes = batch rows; bias materialized once as a (C*H*W,) row.
        x2 = x.reshape(B, C * S)
        brow = jnp.repeat(bias_row, S)
        out = _tiled_broadcast_add(x2, brow, vmem_limit, tile_budget)
        return out.reshape(B, C, H, W)

    # 2-D path.
    B = x.shape[0]
    if C >= _LANE:
        return _tiled_broadcast_add(x, bias_row, vmem_limit, tile_budget)

    if _LANE % C == 0:
        # Lane-dense packing: (B, C) -> (B*C/128, 128), bias tiled to 128 lanes.
        rows_per = _LANE // C
        Bp = ((B + rows_per - 1) // rows_per) * rows_per
        xp = x if Bp == B else jnp.pad(x, ((0, Bp - B), (0, 0)))
        x_packed = xp.reshape(Bp * C // _LANE, _LANE)
        b_packed = jnp.tile(bias_row, rows_per)
        out = _tiled_broadcast_add(x_packed, b_packed, vmem_limit, tile_budget)
        out = out.reshape(Bp, C)
        return out[:B] if Bp != B else out

    # TODO(synk): C < 128 with 128 % C != 0 keeps the narrow (masked-lane) layout.
    return _tiled_broadcast_add(x, bias_row, vmem_limit, tile_budget)


if __name__ == "__main__":
    key = jax.random.PRNGKey(0)
    k1, k2, k3, k4, k5, k6 = jax.random.split(key, 6)

    C = 4
    # Parameter stored exactly like the PyTorch module: bias.unsqueeze(1) -> (C, 1)
    bias_param = jax.random.normal(k1, (C, 1), dtype=jnp.float32)

    # --- Canonical small shapes; force the Pallas path so the kernel is exercised ---
    x2 = jax.random.normal(k2, (8, C), dtype=jnp.float32)           # packed + tail padding
    x4 = jax.random.normal(k3, (2, C, 16, 16), dtype=jnp.float32)   # lane-dense flatten
    y2 = add_bias(x2, bias_param, min_pallas_bytes=0)
    y4 = add_bias(x4, bias_param, min_pallas_bytes=0)

    # Default dispatcher on the same small shapes (fused XLA fast path).
    y2_d = add_bias(x2, bias_param)
    y4_d = add_bias(x4, bias_param)

    # --- Moderately sized inputs that take the Pallas path through the default dispatch ---
    x2_big = jax.random.normal(k4, (32768, C), dtype=jnp.float32)        # packed, no padding
    x4_big = jax.random.normal(k5, (8, 16, 64, 64), dtype=jnp.float32)   # lane-dense 4-D
    bias16 = jax.random.normal(k6, (16, 1), dtype=jnp.float32)
    y2_big = add_bias(x2_big, bias_param)
    y4_big = add_bias(x4_big, bias16)

    # Wide-channel 2-D with a multi-step row grid and a partial edge block.
    xw = jax.random.normal(k2, (10000, 256), dtype=jnp.float32)
    biasw = jax.random.normal(k3, (256, 1), dtype=jnp.float32)
    yw = add_bias(xw, biasw)

    # bf16 input: bias is cast to x.dtype inside the wrapper.
    xb = x2_big.astype(jnp.bfloat16)
    yb = add_bias(xb, bias_param)

    jax.block_until_ready((y2, y4, y2_d, y4_d, y2_big, y4_big, yw, yb))

    def ref2(x, b):
        return x + b.reshape(-1).astype(x.dtype)[None, :]

    def ref4(x, b):
        return x + b.reshape(-1).astype(x.dtype)[None, :, None, None]

    assert jnp.allclose(y2, ref2(x2, bias_param), atol=1e-6), "2D forced mismatch"
    assert jnp.allclose(y4, ref4(x4, bias_param), atol=1e-6), "4D forced mismatch"
    assert jnp.allclose(y2_d, ref2(x2, bias_param), atol=1e-6), "2D dispatch mismatch"
    assert jnp.allclose(y4_d, ref4(x4, bias_param), atol=1e-6), "4D dispatch mismatch"
    assert jnp.allclose(y2_big, ref2(x2_big, bias_param), atol=1e-6), "2D big mismatch"
    assert jnp.allclose(y4_big, ref4(x4_big, bias16), atol=1e-6), "4D big mismatch"
    assert jnp.allclose(yw, ref2(xw, biasw), atol=1e-6), "wide-C mismatch"
    assert jnp.allclose(yb, ref2(xb, bias_param), atol=1e-2), "bf16 mismatch"

    print("KERNEL_OK")
</pallas_src>

<mosaic_0001>
module attributes {stable_mosaic.version = 11 : i64} {
  func.func @_add_bias_kernel(%arg0: i32, %arg1: i32, %arg2: memref<1x128xf32, #tpu.memory_space<vmem>>, %arg3: memref<1x128xf32, #tpu.memory_space<vmem>>, %arg4: memref<1x128xf32, #tpu.memory_space<vmem>>) attributes {dimension_semantics = [#tpu.dimension_semantics<parallel>, #tpu.dimension_semantics<parallel>], iteration_bounds = array<i64: 1, 1>, scalar_prefetch = 0 : i64, scratch_operands = 0 : i64, tpu.core_type = #tpu.core_type<tc>, window_params = [{transform_indices = @transform_0, window_bounds = array<i64: 1, 128>}, {transform_indices = @transform_1, window_bounds = array<i64: 1, 128>}, {transform_indices = @transform_2, window_bounds = array<i64: 1, 128>}]} {
    %c0 = arith.constant 0 : index
    %c0_0 = arith.constant 0 : index
    %0 = vector.load %arg2[%c0, %c0_0] : memref<1x128xf32, #tpu.memory_space<vmem>>, vector<1x128xf32>
    %c0_1 = arith.constant 0 : index
    %c0_2 = arith.constant 0 : index
    %1 = vector.load %arg3[%c0_1, %c0_2] : memref<1x128xf32, #tpu.memory_space<vmem>>, vector<1x128xf32>
    %2 = arith.addf %0, %1 : vector<1x128xf32>
    %c0_3 = arith.constant 0 : index
    %c0_4 = arith.constant 0 : index
    %3 = vector.load %arg4[%c0_3, %c0_4] : memref<1x128xf32, #tpu.memory_space<vmem>>, vector<1x128xf32>
    tpu.vector_store %arg4[%c0_3, %c0_4], %2 {strides = array<i32>} : memref<1x128xf32, #tpu.memory_space<vmem>>, vector<1x128xf32>,
    return
  }
  func.func @transform_0(%arg0: i32, %arg1: i32) -> (i32, i32) {
    %c0_i32 = arith.constant 0 : i32
    return %arg0, %arg1 : i32, i32
  }
  func.func @transform_1(%arg0: i32, %arg1: i32) -> (i32, i32) {
    %c0_i32 = arith.constant 0 : i32
    %c0_i32_0 = arith.constant 0 : i32
    return %c0_i32, %arg1 : i32, i32
  }
  func.func @transform_2(%arg0: i32, %arg1: i32) -> (i32, i32) {
    %c0_i32 = arith.constant 0 : i32
    return %arg0, %arg1 : i32, i32
  }
}

</mosaic_0001>

<bundles_post_ra>
// kernel: tpu_custom_call.1
= control target key start
LH: loop header
LB: loop body
LE: loop exit
PB: predicated region body
PF: predicated region fallthrough
CT: control target
= control target key end

     0   :  { %7 = vsyncpa [#allocation3], 0  ;;  %s115_s0 = inlined_call_operand.hbm [shape: f32[1,128], index: 0, kind: input, shape index: {}]   ;;  %s116_s1 = inlined_call_operand.vmem [shape: f32[1,128], index: 1, kind: input, shape index: {}]   ;;  %s117_s2 = inlined_call_operand.hbm [shape: f32[1,128], index: 2, kind: output, shape index: {}]  }
   0x1   :  { %8 = vsyncpa [#allocation4], 0  ;;  %s89_s9 = smov [#allocation2]  }
   0x2   :  { %s15_s10 = sshll.u32 %s89_s9, 4  ;;  %s16_s10 = int_to_ptr.vmem [resolvable:$true] %s15_s10 }
   0x3   :  { %s53_s11 = scalar_lea.vmem %s16_s10, 16  ;;  %s57_s12 = scalar_lea.vmem %s16_s10, 32 }
   0x4   :  { %p54_p0 = scmp.ne.s32.totalorder %s16_s10, %s53_s11  ;;  %p58_p1 = scmp.lt.s32.totalorder %s16_s10, %s16_s10 }
   0x5   :  { %p59_p2 = scmp.lt.s32.totalorder %s57_s12, %s53_s11 }
   0x7   :  { %p60_p3 = por %p59_p2, %p58_p1 }
   0x9   :  { %p61_p4 = pnand %p60_p3, %p54_p0 }
   0xb   :  { %64 = shalt.err (!%p61_p4)
}
   0xc   :  { %18 = dma.hbm_to_vmem [thread:$0]  %s115_s0, 16, %s16_s10, [#allocation3]  }
   0xd   :  { %85 = dma.done.wait [#allocation3], 16  }
   0xe   :  { %86 = vsyncadd [#allocation3], 4294967280  ;;  %s90_s15 = smov [#allocation5]   ;;  %v24_v0 = vld [vmem:[#allocation2] sm:$0x1] }
   0xf   :  { %s34_s16 = sshll.u32 %s90_s15, 4  ;;  %v25_v1 = vld [vmem:[%s116_s1] sm:$0x1]  ;;  %s35_s16 = int_to_ptr.vmem [resolvable:$true] %s34_s16 }
  0x10   :  { %v26_v2 = vadd.f32 %v25_v1, %v24_v0  ;;  %s65_s19 = scalar_lea.vmem %s35_s16, 16  ;;  %s69_s20 = scalar_lea.vmem %s35_s16, 32 }
  0x11   :  { %p66_p5 = scmp.ne.s32.totalorder %s35_s16, %s65_s19  ;;  %p70_p6 = scmp.lt.s32.totalorder %s35_s16, %s35_s16 }
  0x12   :  { %27 = vst [vmem:[#allocation5] sm:$0x1] %v26_v2  ;;  %p71_p7 = scmp.lt.s32.totalorder %s69_s20, %s65_s19 }
  0x14   :  { %p72_p8 = por %p71_p7, %p70_p6 }
  0x16   :  { %p73_p9 = pnand %p72_p8, %p66_p5 }
  0x18   :  { %76 = shalt.err (!%p73_p9)
}
  0x19   :  { %37 = dma.vmem_to_hbm [thread:$0]  %s35_s16, 16, %s117_s2, [#allocation4]  }
  0x1a   :  { %87 = dma.done.wait [#allocation4], 16  }
  0x1b   :  { %88 = vsyncadd [#allocation4], 4294967280 }
  0x1c   :  { %41 = vsyncpa [#allocation3], 1 }
  0x1d   :  { %42 = vsyncpa [#allocation4], 1 }

</bundles_post_ra>
